<compile_context>
chip_gen: v6e
topology: v6e:2x2x1
jax: 0.10.0
libtpu: 0.0.40
codegen_flags: <defaults>
</compile_context>

<pallas_src>
import jax
import jax.numpy as jnp
from jax.experimental import pallas as pl
from jax.experimental.pallas import tpu as pltpu

# ---- model hyperparameters (matching the torch module's __init__ args) ----
INPUT_D = 16
HIDDEN_D = 32
OUTPUT_D = 8
NUM_LAYERS = 3          # Linear(in,hid), Linear(hid,hid), Linear(hid,out)
NORM = "layer"          # LayerNorm(hidden_d) after every non-final linear
INIT_ACTIVATE = False
DROPOUT = 0.0           # eval mode -> identity
LN_EPS = 1e-5
_NUM_VEC = 7            # b1, g1, beta1, b2, g2, beta2, b3(padded)


def _round_up(n, m):
    return ((n + m - 1) // m) * m


def _layernorm_feat(h, gamma, beta, eps=LN_EPS):
    """LayerNorm over the feature axis (axis 0) of an (F, B) tile.

    Centered two-pass moments (var = E[(h-mu)^2]) — numerically safer than the
    single-pass form and only a few extra VALU ops per lane group.
    gamma/beta are (F, 1) and broadcast over the lane (batch) axis.
    """
    mu = jnp.mean(h, axis=0, keepdims=True)           # (1, B)
    d = h - mu
    var = jnp.mean(d * d, axis=0, keepdims=True)      # (1, B)
    return d * jax.lax.rsqrt(var + eps) * gamma + beta


def _make_kernel(n_valid, batch_tile, ragged):
    """Kernel factory closing over static batch geometry."""

    def mlp_kernel(x_ref, w1_ref, w2_ref, w3_ref, vecs_ref, o_ref):
        x = x_ref[...]                        # (batch_tile, INPUT_D), row-major block
        if x.dtype != jnp.float32:            # trace-time branch; no-op for f32 inputs
            x = x.astype(jnp.float32)

        if ragged:
            # Zero garbage rows of the partial last block (columns are
            # independent through matmul/LN, and Pallas drops out-of-bounds
            # writes, so this is pure insurance against stray inf/NaN).
            i = pl.program_id(0)
            valid = n_valid - i * batch_tile
            rows = jax.lax.broadcasted_iota(jnp.int32, x.shape, 0)
            x = jnp.where(rows < valid, x, 0.0)

        vecs = vecs_ref[...]                  # (HIDDEN_D, 7), f32
        b1, g1, be1 = vecs[:, 0:1], vecs[:, 1:2], vecs[:, 2:3]
        b2, g2, be2 = vecs[:, 3:4], vecs[:, 4:5], vecs[:, 5:6]
        b3 = vecs[:OUTPUT_D, 6:7]             # (OUTPUT_D, 1)

        # layer 1: Linear(input_d, hidden_d) + LayerNorm + ReLU
        # W1 (H, D_in) contracted with x (bt, D_in) on dim 1  ->  (H, bt)
        # (A @ B^T MXU form; no explicit transpose of x is materialized.)
        h = jax.lax.dot_general(
            w1_ref[...], x, (((1,), (1,)), ((), ())),
            preferred_element_type=jnp.float32) + b1
        h = jnp.maximum(_layernorm_feat(h, g1, be1), 0.0)

        # layer 2: Linear(hidden_d, hidden_d) + LayerNorm + ReLU
        h = jnp.dot(w2_ref[...], h, preferred_element_type=jnp.float32) + b2
        h = jnp.maximum(_layernorm_feat(h, g2, be2), 0.0)

        # layer 3 (final): Linear(hidden_d, output_d), no activation.
        o = jnp.dot(w3_ref[...], h, preferred_element_type=jnp.float32) + b3
        # Small in-kernel XLU transpose (8, bt) -> (bt, 8): avoids a wrapper-side
        # XLA transpose (an extra HBM read+write pass over the output).
        o_ref[...] = o.T.astype(o_ref.dtype)

    return mlp_kernel

# TODO(synk): bf16 post-moment LN/ReLU math (v6e/v7x only) and MXU-assisted mean
# (extra W row) are further micro-opts not applied here; f32 elementwise keeps
# the kernel correct and portable to v5e.


def pack_params(params):
    """Pack raw per-layer params once (hoisted out of the per-call wrapper):
    weights stay in torch (out, in) layout; the 7 per-feature vectors are
    stacked into a single (HIDDEN_D, 7) VMEM-resident block."""
    (w1, b1, g1, be1, w2, b2, g2, be2, w3, b3) = params
    b3_pad = jnp.zeros((HIDDEN_D,), jnp.float32).at[:OUTPUT_D].set(b3)
    vecs = jnp.stack([b1, g1, be1, b2, g2, be2, b3_pad], axis=1)  # (HIDDEN_D, 7)
    return (w1.astype(jnp.float32), w2.astype(jnp.float32),
            w3.astype(jnp.float32), vecs.astype(jnp.float32))


def mlp_forward(x, packed_params, *, batch_tile=None, out_dtype=None):
    """x: (N, INPUT_D) -> (N, OUTPUT_D).  No wrapper-side relayout of x."""
    w1, w2, w3, vecs = packed_params
    N = x.shape[0]
    if out_dtype is None:
        out_dtype = x.dtype

    if batch_tile is None:
        # Big lane-dense tiles amortize the ~0.35 us per-grid-step overhead;
        # 4096 keeps the worst-case (lane-padded) double-buffered footprint
        # under v5e's 16 MiB default scoped VMEM.  For N >= 256, clamp so the
        # grid has >= 2 "parallel" steps (shards across both v7x TensorCores).
        batch_tile = min(4096, _round_up(N, 128))
        if N >= 256:
            batch_tile = min(batch_tile, _round_up(-(-N // 2), 128))
    batch_tile = max(128, _round_up(batch_tile, 128))

    n_rows = N
    if N < batch_tile:
        # Tiny-batch fallback only: pad to one full tile (negligible cost here).
        x = jnp.pad(x, ((0, batch_tile - N), (0, 0)))
        n_rows = batch_tile
    grid = (pl.cdiv(n_rows, batch_tile),)
    ragged = (n_rows % batch_tile) != 0   # partial last block handled in-kernel

    kernel = _make_kernel(N, batch_tile, ragged)

    def const_spec(a):
        return pl.BlockSpec(a.shape, lambda i: (0, 0))

    in_bytes = jnp.dtype(x.dtype).itemsize
    out_bytes = jnp.dtype(out_dtype).itemsize
    cost = pl.CostEstimate(
        flops=2 * N * (INPUT_D * HIDDEN_D + HIDDEN_D * HIDDEN_D + HIDDEN_D * OUTPUT_D),
        transcendentals=2 * N,   # one rsqrt per LayerNorm per row
        bytes_accessed=N * (INPUT_D * in_bytes + OUTPUT_D * out_bytes)
                       + 4 * (w1.size + w2.size + w3.size + vecs.size),
    )

    out = pl.pallas_call(
        kernel,
        out_shape=jax.ShapeDtypeStruct((n_rows, OUTPUT_D), out_dtype),
        grid_spec=pltpu.PrefetchScalarGridSpec(
            num_scalar_prefetch=0,
            grid=grid,
            in_specs=[pl.BlockSpec((batch_tile, INPUT_D), lambda i: (i, 0)),  # x tile
                      const_spec(w1),            # (HIDDEN_D, INPUT_D)
                      const_spec(w2),            # (HIDDEN_D, HIDDEN_D)
                      const_spec(w3),            # (OUTPUT_D, HIDDEN_D)
                      const_spec(vecs)],         # (HIDDEN_D, 7)
            out_specs=pl.BlockSpec((batch_tile, OUTPUT_D), lambda i: (i, 0)),
        ),
        compiler_params=pltpu.CompilerParams(
            dimension_semantics=("parallel",)),
        cost_estimate=cost,
    )(x, w1, w2, w3, vecs)

    return out[:N] if n_rows != N else out


def init_params(key):
    """Mirror reset_params(): xavier_normal_ weights (torch (out, in) layout),
    torch-default uniform biases, LayerNorm gamma=1 / beta=0."""
    def xavier_normal(k, fan_out, fan_in):
        std = jnp.sqrt(2.0 / (fan_in + fan_out))
        return jax.random.normal(k, (fan_out, fan_in), jnp.float32) * std

    ks = jax.random.split(key, 6)
    w1 = xavier_normal(ks[0], HIDDEN_D, INPUT_D)
    b1 = jax.random.uniform(ks[1], (HIDDEN_D,), jnp.float32, -1.0, 1.0) / jnp.sqrt(float(INPUT_D))
    w2 = xavier_normal(ks[2], HIDDEN_D, HIDDEN_D)
    b2 = jax.random.uniform(ks[3], (HIDDEN_D,), jnp.float32, -1.0, 1.0) / jnp.sqrt(float(HIDDEN_D))
    w3 = xavier_normal(ks[4], OUTPUT_D, HIDDEN_D)
    b3 = jax.random.uniform(ks[5], (OUTPUT_D,), jnp.float32, -1.0, 1.0) / jnp.sqrt(float(HIDDEN_D))
    g1 = jnp.ones((HIDDEN_D,), jnp.float32)
    be1 = jnp.zeros((HIDDEN_D,), jnp.float32)
    g2 = jnp.ones((HIDDEN_D,), jnp.float32)
    be2 = jnp.zeros((HIDDEN_D,), jnp.float32)
    return (w1, b1, g1, be1, w2, b2, g2, be2, w3, b3)


def _ln_ref(h, gamma, beta, eps=LN_EPS):
    mu = jnp.mean(h, axis=-1, keepdims=True)
    var = jnp.mean((h - mu) ** 2, axis=-1, keepdims=True)
    return (h - mu) * jax.lax.rsqrt(var + eps) * gamma + beta


def mlp_reference(x, params):
    (w1, b1, g1, be1, w2, b2, g2, be2, w3, b3) = params
    h = x @ w1.T + b1
    h = jnp.maximum(_ln_ref(h, g1, be1), 0.0)
    h = h @ w2.T + b2
    h = jnp.maximum(_ln_ref(h, g2, be2), 0.0)
    return h @ w3.T + b3


# TODO(synk): norm='batch' (BatchNorm1d) and init_activate=True variants of the
# module are not implemented; this kernel covers the norm='layer',
# init_activate=False, num_layers=3 configuration in eval mode.

if __name__ == "__main__":
    key = jax.random.PRNGKey(0)
    kx, kp = jax.random.split(key)
    params = init_params(kp)
    packed = pack_params(params)

    # Primary check: N=512 -> two 256-row tiles, grid=(2,) (exercises pipelining
    # and v7x megacore sharding), no padding, no ragged block.
    N = 512
    x = jax.random.normal(kx, (N, INPUT_D), jnp.float32)
    out = jax.block_until_ready(mlp_forward(x, packed))
    ref = mlp_reference(x, params)
    assert out.shape == (N, OUTPUT_D)
    assert jnp.allclose(out, ref, atol=1e-4, rtol=1e-4), "mismatch vs pure-JAX reference"

    # Ragged check: N=300 -> 256-row tiles, grid=(2,), partial last block with
    # in-kernel column masking and dropped out-of-bounds writes.
    N3 = 300
    x3 = jax.random.normal(jax.random.PRNGKey(2), (N3, INPUT_D), jnp.float32)
    out3 = jax.block_until_ready(mlp_forward(x3, packed))
    ref3 = mlp_reference(x3, params)
    assert out3.shape == (N3, OUTPUT_D)
    assert jnp.allclose(out3, ref3, atol=1e-4, rtol=1e-4), "mismatch (ragged path)"

    # Tiny-batch check: N=8 < one tile -> wrapper pads to a single 128-row tile.
    N2 = 8
    x2 = jax.random.normal(jax.random.PRNGKey(1), (N2, INPUT_D), jnp.float32)
    out2 = jax.block_until_ready(mlp_forward(x2, packed))
    ref2 = mlp_reference(x2, params)
    assert out2.shape == (N2, OUTPUT_D)
    assert jnp.allclose(out2, ref2, atol=1e-4, rtol=1e-4), "mismatch (tiny-batch path)"

    print("KERNEL_OK")
</pallas_src>

<mosaic_0001>
module attributes {stable_mosaic.version = 11 : i64} {
  func.func @mlp_kernel(%arg0: i32, %arg1: memref<256x16xf32, #tpu.memory_space<vmem>>, %arg2: memref<32x16xf32, #tpu.memory_space<vmem>>, %arg3: memref<32x32xf32, #tpu.memory_space<vmem>>, %arg4: memref<8x32xf32, #tpu.memory_space<vmem>>, %arg5: memref<32x7xf32, #tpu.memory_space<vmem>>, %arg6: memref<256x8xf32, #tpu.memory_space<vmem>>) attributes {dimension_semantics = [#tpu.dimension_semantics<parallel>], iteration_bounds = array<i64: 2>, scalar_prefetch = 0 : i64, scratch_operands = 0 : i64, tpu.core_type = #tpu.core_type<tc>, window_params = [{transform_indices = @transform_0, window_bounds = array<i64: 256, 16>}, {pipeline_mode = #tpu.pipeline_mode<synchronous>, transform_indices = @transform_1, window_bounds = array<i64: 32, 16>}, {pipeline_mode = #tpu.pipeline_mode<synchronous>, transform_indices = @transform_2, window_bounds = array<i64: 32, 32>}, {pipeline_mode = #tpu.pipeline_mode<synchronous>, transform_indices = @transform_3, window_bounds = array<i64: 8, 32>}, {pipeline_mode = #tpu.pipeline_mode<synchronous>, transform_indices = @transform_4, window_bounds = array<i64: 32, 7>}, {transform_indices = @transform_5, window_bounds = array<i64: 256, 8>}]} {
    %c0 = arith.constant 0 : index
    %c0_0 = arith.constant 0 : index
    %0 = vector.load %arg1[%c0, %c0_0] : memref<256x16xf32, #tpu.memory_space<vmem>>, vector<256x16xf32>
    %c0_1 = arith.constant 0 : index
    %c0_2 = arith.constant 0 : index
    %1 = vector.load %arg5[%c0_1, %c0_2] : memref<32x7xf32, #tpu.memory_space<vmem>>, vector<32x7xf32>
    %2 = vector.extract_strided_slice %1 {offsets = [0, 0], sizes = [32, 1], strides = [1, 1]} : vector<32x7xf32> to vector<32x1xf32>
    %3 = vector.extract_strided_slice %1 {offsets = [0, 1], sizes = [32, 1], strides = [1, 1]} : vector<32x7xf32> to vector<32x1xf32>
    %4 = vector.extract_strided_slice %1 {offsets = [0, 2], sizes = [32, 1], strides = [1, 1]} : vector<32x7xf32> to vector<32x1xf32>
    %5 = vector.extract_strided_slice %1 {offsets = [0, 3], sizes = [32, 1], strides = [1, 1]} : vector<32x7xf32> to vector<32x1xf32>
    %6 = vector.extract_strided_slice %1 {offsets = [0, 4], sizes = [32, 1], strides = [1, 1]} : vector<32x7xf32> to vector<32x1xf32>
    %7 = vector.extract_strided_slice %1 {offsets = [0, 5], sizes = [32, 1], strides = [1, 1]} : vector<32x7xf32> to vector<32x1xf32>
    %8 = vector.extract_strided_slice %1 {offsets = [0, 6], sizes = [8, 1], strides = [1, 1]} : vector<32x7xf32> to vector<8x1xf32>
    %c0_3 = arith.constant 0 : index
    %c0_4 = arith.constant 0 : index
    %9 = vector.load %arg2[%c0_3, %c0_4] : memref<32x16xf32, #tpu.memory_space<vmem>>, vector<32x16xf32>
    %cst = arith.constant dense<0.000000e+00> : vector<32x256xf32>
    %10 = tpu.matmul %9, %0, %cst {dimension_numbers = #tpu.dot_dimension_numbers<[1], [1], [0], [0], [0, 0, 1, 0], [], []>} : vector<32x16xf32>, vector<256x16xf32>, vector<32x256xf32> -> vector<32x256xf32>
    %11 = vector.broadcast %2 : vector<32x1xf32> to vector<32x256xf32>
    %12 = arith.addf %10, %11 : vector<32x256xf32>
    %cst_5 = arith.constant dense<0.000000e+00> : vector<256xf32>
    %13 = vector.multi_reduction <add>, %12, %cst_5 [0] : vector<32x256xf32> to vector<256xf32>
    %14 = vector.shape_cast %13 : vector<256xf32> to vector<1x256xf32>
    %cst_6 = arith.constant 3.200000e+01 : f32
    %15 = vector.broadcast %cst_6 : f32 to vector<1x256xf32>
    %16 = arith.divf %14, %15 : vector<1x256xf32>
    %17 = vector.broadcast %16 : vector<1x256xf32> to vector<32x256xf32>
    %18 = arith.subf %12, %17 : vector<32x256xf32>
    %19 = arith.mulf %18, %18 : vector<32x256xf32>
    %cst_7 = arith.constant dense<0.000000e+00> : vector<256xf32>
    %20 = vector.multi_reduction <add>, %19, %cst_7 [0] : vector<32x256xf32> to vector<256xf32>
    %21 = vector.shape_cast %20 : vector<256xf32> to vector<1x256xf32>
    %cst_8 = arith.constant 3.200000e+01 : f32
    %22 = vector.broadcast %cst_8 : f32 to vector<1x256xf32>
    %23 = arith.divf %21, %22 : vector<1x256xf32>
    %cst_9 = arith.constant 9.99999974E-6 : f32
    %24 = vector.broadcast %cst_9 : f32 to vector<1x256xf32>
    %25 = arith.addf %23, %24 : vector<1x256xf32>
    %26 = math.rsqrt %25 : vector<1x256xf32>
    %27 = vector.broadcast %26 : vector<1x256xf32> to vector<32x256xf32>
    %28 = arith.mulf %18, %27 : vector<32x256xf32>
    %29 = vector.broadcast %3 : vector<32x1xf32> to vector<32x256xf32>
    %30 = arith.mulf %28, %29 : vector<32x256xf32>
    %31 = vector.broadcast %4 : vector<32x1xf32> to vector<32x256xf32>
    %32 = arith.addf %30, %31 : vector<32x256xf32>
    %cst_10 = arith.constant 0.000000e+00 : f32
    %33 = vector.broadcast %cst_10 : f32 to vector<32x256xf32>
    %34 = arith.maximumf %32, %33 : vector<32x256xf32>
    %c0_11 = arith.constant 0 : index
    %c0_12 = arith.constant 0 : index
    %35 = vector.load %arg3[%c0_11, %c0_12] : memref<32x32xf32, #tpu.memory_space<vmem>>, vector<32x32xf32>
    %cst_13 = arith.constant dense<0.000000e+00> : vector<32x256xf32>
    %36 = tpu.matmul %35, %34, %cst_13 {dimension_numbers = #tpu.dot_dimension_numbers<[1], [0], [0], [1], [0, 0, 1, 1], [], []>} : vector<32x32xf32>, vector<32x256xf32>, vector<32x256xf32> -> vector<32x256xf32>
    %37 = vector.broadcast %5 : vector<32x1xf32> to vector<32x256xf32>
    %38 = arith.addf %36, %37 : vector<32x256xf32>
    %cst_14 = arith.constant dense<0.000000e+00> : vector<256xf32>
    %39 = vector.multi_reduction <add>, %38, %cst_14 [0] : vector<32x256xf32> to vector<256xf32>
    %40 = vector.shape_cast %39 : vector<256xf32> to vector<1x256xf32>
    %cst_15 = arith.constant 3.200000e+01 : f32
    %41 = vector.broadcast %cst_15 : f32 to vector<1x256xf32>
    %42 = arith.divf %40, %41 : vector<1x256xf32>
    %43 = vector.broadcast %42 : vector<1x256xf32> to vector<32x256xf32>
    %44 = arith.subf %38, %43 : vector<32x256xf32>
    %45 = arith.mulf %44, %44 : vector<32x256xf32>
    %cst_16 = arith.constant dense<0.000000e+00> : vector<256xf32>
    %46 = vector.multi_reduction <add>, %45, %cst_16 [0] : vector<32x256xf32> to vector<256xf32>
    %47 = vector.shape_cast %46 : vector<256xf32> to vector<1x256xf32>
    %cst_17 = arith.constant 3.200000e+01 : f32
    %48 = vector.broadcast %cst_17 : f32 to vector<1x256xf32>
    %49 = arith.divf %47, %48 : vector<1x256xf32>
    %cst_18 = arith.constant 9.99999974E-6 : f32
    %50 = vector.broadcast %cst_18 : f32 to vector<1x256xf32>
    %51 = arith.addf %49, %50 : vector<1x256xf32>
    %52 = math.rsqrt %51 : vector<1x256xf32>
    %53 = vector.broadcast %52 : vector<1x256xf32> to vector<32x256xf32>
    %54 = arith.mulf %44, %53 : vector<32x256xf32>
    %55 = vector.broadcast %6 : vector<32x1xf32> to vector<32x256xf32>
    %56 = arith.mulf %54, %55 : vector<32x256xf32>
    %57 = vector.broadcast %7 : vector<32x1xf32> to vector<32x256xf32>
    %58 = arith.addf %56, %57 : vector<32x256xf32>
    %cst_19 = arith.constant 0.000000e+00 : f32
    %59 = vector.broadcast %cst_19 : f32 to vector<32x256xf32>
    %60 = arith.maximumf %58, %59 : vector<32x256xf32>
    %c0_20 = arith.constant 0 : index
    %c0_21 = arith.constant 0 : index
    %61 = vector.load %arg4[%c0_20, %c0_21] : memref<8x32xf32, #tpu.memory_space<vmem>>, vector<8x32xf32>
    %cst_22 = arith.constant dense<0.000000e+00> : vector<8x256xf32>
    %62 = tpu.matmul %61, %60, %cst_22 {dimension_numbers = #tpu.dot_dimension_numbers<[1], [0], [0], [1], [0, 0, 1, 1], [], []>} : vector<8x32xf32>, vector<32x256xf32>, vector<8x256xf32> -> vector<8x256xf32>
    %63 = vector.broadcast %8 : vector<8x1xf32> to vector<8x256xf32>
    %64 = arith.addf %62, %63 : vector<8x256xf32>
    %65 = tpu.transpose %64, [1, 0] : vector<8x256xf32> -> vector<256x8xf32>
    %c0_23 = arith.constant 0 : index
    %c0_24 = arith.constant 0 : index
    %66 = vector.load %arg6[%c0_23, %c0_24] : memref<256x8xf32, #tpu.memory_space<vmem>>, vector<256x8xf32>
    tpu.vector_store %arg6[%c0_23, %c0_24], %65 {strides = array<i32>} : memref<256x8xf32, #tpu.memory_space<vmem>>, vector<256x8xf32>,
    return
  }
  func.func @transform_0(%arg0: i32) -> (i32, i32) {
    %c0_i32 = arith.constant 0 : i32
    %c0_i32_0 = arith.constant 0 : i32
    return %arg0, %c0_i32 : i32, i32
  }
  func.func @transform_1(%arg0: i32) -> (i32, i32) {
    %c0_i32 = arith.constant 0 : i32
    %c0_i32_0 = arith.constant 0 : i32
    %c0_i32_1 = arith.constant 0 : i32
    return %c0_i32, %c0_i32_0 : i32, i32
  }
  func.func @transform_2(%arg0: i32) -> (i32, i32) {
    %c0_i32 = arith.constant 0 : i32
    %c0_i32_0 = arith.constant 0 : i32
    %c0_i32_1 = arith.constant 0 : i32
    return %c0_i32, %c0_i32_0 : i32, i32
  }
  func.func @transform_3(%arg0: i32) -> (i32, i32) {
    %c0_i32 = arith.constant 0 : i32
    %c0_i32_0 = arith.constant 0 : i32
    %c0_i32_1 = arith.constant 0 : i32
    return %c0_i32, %c0_i32_0 : i32, i32
  }
  func.func @transform_4(%arg0: i32) -> (i32, i32) {
    %c0_i32 = arith.constant 0 : i32
    %c0_i32_0 = arith.constant 0 : i32
    %c0_i32_1 = arith.constant 0 : i32
    return %c0_i32, %c0_i32_0 : i32, i32
  }
  func.func @transform_5(%arg0: i32) -> (i32, i32) {
    %c0_i32 = arith.constant 0 : i32
    %c0_i32_0 = arith.constant 0 : i32
    return %arg0, %c0_i32 : i32, i32
  }
}

</mosaic_0001>

<bundles_post_ra>
// kernel: tpu_custom_call.1
= control target key start
LH: loop header
LB: loop body
LE: loop exit
PB: predicated region body
PF: predicated region fallthrough
CT: control target
= control target key end

     0   :  { %s1267_s18 = smov 0   ;;  %s1519_s0 = inlined_call_operand.vmem [shape: f32[512,16], index: 0, kind: input, shape index: {}]   ;;  %s1520_s1 = inlined_call_operand.vmem [shape: f32[32,16], index: 1, kind: input, shape index: {}]   ;;  %s1521_s2 = inlined_call_operand.vmem [shape: f32[32,32], index: 2, kind: input, shape index: {}]   ;;  %s1522_s3 = inlined_call_operand.vmem [shape: f32[8,32], index: 3, kind: input, shape index: {}]   ;;  %s1523_s4 = inlined_call_operand.vmem [shape: f32[32,7], index: 4, kind: input, shape index: {}]   ;;  %s1524_s5 = inlined_call_operand.vmem [shape: f32[512,8], index: 5, kind: output, shape index: {}]  }
   0x1 LB: > { %s1089_s19 = sadd.s32 4294967295, %s1227_s18   ;;  %p1093_p0 = scmp.ge.s32.totalorder %s1227_s18, 1  ;;  %s1227_s18 = sphi %s1267_s18, %s15_s18  }
   0x2   : > { %p188_p1 = scmp.lt.s32.totalorder %s1227_s18, 3 }
   0x4   : > { %p189_p2 = pnand %p1093_p0, %p188_p1 }
   0x5   : > { %s1094_s20 = sshll.u32 (!%p189_p2), %s1089_s19, 5 }
   0x6   : > { %192 = sbr.rel (%p189_p2) target bundleno = 1024 (0x400), region = 40  ;;  %p217_p3 = scmp.lt.s32.totalorder (!%p189_p2), %s1094_s20, 63 }
   0xb   : > { %vm288_vm0 = vcmask 130048   ;;  %v1278_v0 = vld [vmem:[%s1520_s1] sm:$0xff]  ;;  %v1229_v1 = vmov 0   ;;  %v1291_v3 = vld [vmem:[%s1523_s4 + $0x10] sm:$0xff]  ;;  %s1526_s20 = smov (!%p217_p3, %s1094_s20), 63  ;;  %v1298_v4 = vld [vmem:[%s1523_s4 + $0x8] sm:$0xff] }
   0xc   : > { %1173 = vmatprep.mubr.msk.f32.mxu0 %vm288_vm0, %v1278_v0  ;;  %1197 = vset.pattern.permute.xlu0 %v1229_v1  ;;  %v1285_v2 = vld [vmem:[%s1523_s4] sm:$0xff]  ;;  %v1304_v5 = vld [vmem:[%s1523_s4 + $0x18] sm:$0xff]  ;;  %s1095_s6 = sshll.u32 %s1526_s20, 3  ;;  %v1230_v10 = vmov 1   ;;  %v1231_v14 = vmov 2   ;;  %v265_v40 = vld [vmem:[%s1520_s1 + $0x8] sm:$0xff] }
   0xd   : > { %270 = vperm.xlu0 %1197, %v1285_v2   ;;  %1198 = vset.pattern.permute.xlu1 %v1229_v1  ;;  %s1312_s9 = scalar_lea.vmem %s1519_s0, %s1095_s6  ;;  %v266_v41 = vld [vmem:[%s1520_s1 + $0x10] sm:$0xff]  ;;  %v267_v42 = vld [vmem:[%s1520_s1 + $0x18] sm:$0xff]  ;;  %v1232_v43 = vmov 0.0   ;;  %v1233_v44 = vmov 3   ;;  %v1234_v45 = vmov 4   ;;  %v1235_v46 = vmov 5   ;;  %s1450_s30 = scalar_lea.vmem %s1524_s5, %s1095_s6 }
   0xe   : > { %280 = vperm.xlu1 %1198, %v1291_v3   ;;  %v259_v6 = vld [vmem:[%s1312_s9 + $0xf8] sm:$0xff]  ;;  %v258_v8 = vld [vmem:[%s1312_s9 + $0xf0] sm:$0xff]  ;;  %v257_v11 = vld [vmem:[%s1312_s9 + $0xe8] sm:$0xff]  ;;  %708 = vmatprep.mubr.f32.mxu1 %v1232_v43  ;;  %vm631_vm1 = vcmask 261120   ;;  %vm1000_vm2 = vcmask 64512  }
   0xf   : > { %v243_v7 = vld [vmem:[%s1312_s9 + $0x78] sm:$0xff]  ;;  %1141 = vmatprep.subr.msk.mxu0 %vm288_vm0, %v259_v6  ;;  %v242_v9 = vld [vmem:[%s1312_s9 + $0x70] sm:$0xff]  ;;  %v241_v12 = vld [vmem:[%s1312_s9 + $0x68] sm:$0xff] }
  0x10   : > { %1142 = vmatpush3.xpose.msk.msra.mxu0 %vm288_vm0, %v243_v7  ;;  %v256_v13 = vld [vmem:[%s1312_s9 + $0xe0] sm:$0xff]  ;;  %v255_v16 = vld [vmem:[%s1312_s9 + $0xd8] sm:$0xff]  ;;  %v254_v18 = vld [vmem:[%s1312_s9 + $0xd0] sm:$0xff] }
  0x11   : > { %275 = vperm.xlu0 %1197, %v1298_v4   ;;  %1143 = vmatprep.subr.msk.mxu0 %vm288_vm0, %v258_v8  ;;  %v240_v15 = vld [vmem:[%s1312_s9 + $0x60] sm:$0xff]  ;;  %v239_v17 = vld [vmem:[%s1312_s9 + $0x58] sm:$0xff]  ;;  %v238_v19 = vld [vmem:[%s1312_s9 + $0x50] sm:$0xff] }
  0x12   : > { %285 = vperm.xlu1 %1198, %v1304_v5   ;;  %v253_v20 = vld [vmem:[%s1312_s9 + $0xc8] sm:$0xff]  ;;  %v252_v22 = vld [vmem:[%s1312_s9 + $0xc0] sm:$0xff]  ;;  %v251_v24 = vld [vmem:[%s1312_s9 + $0xb8] sm:$0xff] }
  0x13   : > { %v237_v21 = vld [vmem:[%s1312_s9 + $0x48] sm:$0xff]  ;;  %v236_v23 = vld [vmem:[%s1312_s9 + $0x40] sm:$0xff]  ;;  %v235_v25 = vld [vmem:[%s1312_s9 + $0x38] sm:$0xff] }
  0x14   : > { %1144 = vmatpush3.xpose.msk.msra.mxu0 %vm288_vm0, %v242_v9  ;;  %v250_v26 = vld [vmem:[%s1312_s9 + $0xb0] sm:$0xff]  ;;  %v249_v28 = vld [vmem:[%s1312_s9 + $0xa8] sm:$0xff]  ;;  %v248_v30 = vld [vmem:[%s1312_s9 + $0xa0] sm:$0xff] }
  0x15   : > { %1199 = vset.pattern.permute.xlu0 %v1230_v10  ;;  %1145 = vmatprep.subr.msk.mxu0 %vm288_vm0, %v257_v11  ;;  %v234_v27 = vld [vmem:[%s1312_s9 + $0x30] sm:$0xff]  ;;  %v233_v29 = vld [vmem:[%s1312_s9 + $0x28] sm:$0xff]  ;;  %v232_v31 = vld [vmem:[%s1312_s9 + $0x20] sm:$0xff] }
  0x16   : > { %1200 = vset.pattern.permute.xlu1 %v1230_v10  ;;  %568 = vperm.xlu0 %1199, %v1304_v5   ;;  %v247_v32 = vld [vmem:[%s1312_s9 + $0x98] sm:$0xff]  ;;  %v246_v34 = vld [vmem:[%s1312_s9 + $0x90] sm:$0xff]  ;;  %v245_v36 = vld [vmem:[%s1312_s9 + $0x88] sm:$0xff] }
  0x17   : > { %564 = vperm.xlu1 %1200, %v1291_v3   ;;  %v231_v33 = vld [vmem:[%s1312_s9 + $0x18] sm:$0xff]  ;;  %v230_v35 = vld [vmem:[%s1312_s9 + $0x10] sm:$0xff]  ;;  %v229_v37 = vld [vmem:[%s1312_s9 + $0x8] sm:$0xff] }
  0x18   : > { %1146 = vmatpush3.xpose.msk.msra.mxu0 %vm288_vm0, %v241_v12  ;;  %v244_v38 = vld [vmem:[%s1312_s9 + $0x80] sm:$0xff] }
  0x19   : > { %1147 = vmatprep.subr.msk.mxu0 %vm288_vm0, %v256_v13  ;;  %v228_v39 = vld [vmem:[%s1312_s9] sm:$0xff] }
  0x1a   : > { %560 = vperm.xlu0 %1199, %v1298_v4  }
  0x1b   : > { %1201 = vset.pattern.permute.xlu1 %v1231_v14 }
  0x1c   : > { %592 = vperm.xlu1 %1201, %v1304_v5   ;;  %1148 = vmatpush3.xpose.msk.msra.mxu0 %vm288_vm0, %v240_v15 }
  0x1d   : > { %1149 = vmatprep.subr.msk.mxu0 %vm288_vm0, %v255_v16 }
  0x1e   : > { %556 = vperm.xlu0 %1199, %v1285_v2  }
  0x20   : > { %588 = vperm.xlu1 %1201, %v1291_v3   ;;  %1150 = vmatpush3.xpose.msk.msra.mxu0 %vm288_vm0, %v239_v17 }
  0x21   : > { %1151 = vmatprep.subr.msk.mxu0 %vm288_vm0, %v254_v18 }
  0x22   : > { %1202 = vset.pattern.permute.xlu0 %v1231_v14 }
  0x23   : > { %580 = vperm.xlu0 %1202, %v1285_v2  }
  0x24   : > { %584 = vperm.xlu1 %1201, %v1298_v4   ;;  %1152 = vmatpush3.xpose.msk.msra.mxu0 %vm288_vm0, %v238_v19 }
  0x25   : > { %1153 = vmatprep.subr.msk.mxu0 %vm288_vm0, %v253_v20 }
  0x27   : > { %1204 = vset.pattern.permute.xlu0 %v1233_v44 }
  0x28   : > { %1154 = vmatpush3.xpose.msk.msra.mxu0 %vm288_vm0, %v237_v21  ;;  %1203 = vset.pattern.permute.xlu1 %v1233_v44 }
  0x29   : > { %1155 = vmatprep.subr.msk.mxu0 %vm288_vm0, %v252_v22  ;;  %616 = vperm.xlu1 %1203, %v1285_v2  }
  0x2a   : > { %624 = vperm.xlu0 %1204, %v1291_v3  }
  0x2c   : > { %1156 = vmatpush3.xpose.msk.msra.mxu0 %vm288_vm0, %v236_v23 }
  0x2d   : > { %1157 = vmatprep.subr.msk.mxu0 %vm288_vm0, %v251_v24  ;;  %620 = vperm.xlu1 %1203, %v1298_v4  }
  0x2e   : > { %1206 = vset.pattern.permute.xlu0 %v1234_v45 }
  0x2f   : > { %810 = vperm.xlu0 %1206, %v1291_v3  }
  0x30   : > { %1158 = vmatpush3.xpose.msk.msra.mxu0 %vm288_vm0, %v235_v25 }
  0x31   : > { %1159 = vmatprep.subr.msk.mxu0 %vm288_vm0, %v250_v26  ;;  %628 = vperm.xlu1 %1203, %v1304_v5  }
  0x33   : > { %1209 = vset.pattern.permute.xlu0 %v1235_v46 }
  0x34   : > { %1160 = vmatpush3.xpose.msk.msra.mxu0 %vm288_vm0, %v234_v27  ;;  %834 = vperm.xlu0 %1209, %v1291_v3  }
  0x35   : > { %1161 = vmatprep.subr.msk.mxu0 %vm288_vm0, %v249_v28  ;;  %1205 = vset.pattern.permute.xlu1 %v1234_v45 }
  0x36   : > { %814 = vperm.xlu1 %1205, %v1304_v5  }
  0x38   : > { %1162 = vmatpush3.xpose.msk.msra.mxu0 %vm288_vm0, %v233_v29  ;;  %826 = vperm.xlu0 %1209, %v1285_v2  }
  0x39   : > { %1163 = vmatprep.subr.msk.mxu0 %vm288_vm0, %v248_v30 }
  0x3a   : > { %1207 = vset.pattern.permute.xlu1 %v1235_v46 }
  0x3b   : > { %838 = vperm.xlu1 %1207, %v1304_v5  }
  0x3c   : > { %1164 = vmatpush3.xpose.msk.msra.mxu0 %vm288_vm0, %v232_v31 }
  0x3d   : > { %1165 = vmatprep.subr.msk.mxu0 %vm288_vm0, %v247_v32 }
  0x3f   : > { %1208 = vset.pattern.permute.xlu1 %v1234_v45 }
  0x40   : > { %1166 = vmatpush3.xpose.msk.msra.mxu0 %vm288_vm0, %v231_v33  ;;  %806 = vperm.xlu1 %1208, %v1298_v4  }
  0x41   : > { %1167 = vmatprep.subr.msk.mxu0 %vm288_vm0, %v246_v34 }
  0x44   : > { %1168 = vmatpush3.xpose.msk.msra.mxu0 %vm288_vm0, %v230_v35  ;;  %802 = vperm.xlu1 %1208, %v1285_v2  }
  0x45   : > { %1169 = vmatprep.subr.msk.mxu0 %vm288_vm0, %v245_v36 }
  0x48   : > { %1170 = vmatpush3.xpose.msk.msra.mxu0 %vm288_vm0, %v229_v37  ;;  %1210 = vset.pattern.permute.xlu1 %v1235_v46 }
  0x49   : > { %1171 = vmatprep.subr.msk.mxu0 %vm288_vm0, %v244_v38  ;;  %830 = vperm.xlu1 %1210, %v1298_v4  }
  0x4c   : > { %1172 = vmatpush3.xpose.msk.msra.mxu0 %vm288_vm0, %v228_v39 }
  0x4f   : > { %1174 = vmatmul.mubr.msk.f32.vlgmr.msra.gmra.mxu0 %vm288_vm0, %v1278_v0 }
  0x50   : > { %1175 = vmatprep.mubr.msk.f32.mxu0 %vm288_vm0, %v265_v40 }
  0x53   : > { %1176 = vmatmul.mubr.msk.f32.gmra.mxu0 %vm288_vm0, %v265_v40 }
  0x54   : > { %1177 = vmatprep.mubr.msk.f32.mxu0 %vm288_vm0, %v266_v41 }
  0x57   : > { %1178 = vmatmul.mubr.msk.f32.gmra.mxu0 %vm288_vm0, %v266_v41 }
  0x58   : > { %1179 = vmatprep.mubr.msk.f32.mxu0 %vm288_vm0, %v267_v42 }
  0x5b   : > { %1180 = vmatmul.mubr.msk.f32.gmra.mxu0 %vm288_vm0, %v267_v42 }
  0x88   : > { %v271_v47 = vpop.permute.xlu0 %270 }
  0x89   : > { %v281_v52 = vpop.permute.xlu1 %280 }
  0x8c   : > { %v276_v50 = vpop.permute.xlu0 %275 }
  0x8d   : > { %v286_v63 = vpop.permute.xlu1 %285 }
 0x10f   : > { %v463_v48 = vpop.f32.mrf.mxu0 }
 0x110   : > { %v464_v56 = vadd.f32 %v463_v48, %v271_v47 }
 0x111   : > { %v465_v49 = vpop.f32.mrf.mxu0 }
 0x112   : > { %v466_v60 = vadd.f32 %v465_v49, %v271_v47 }
 0x113   : > { %v469_v51 = vpop.f32.mrf.mxu0 }
 0x114   : > { %v470_v54 = vadd.f32 %v469_v51, %v276_v50 }
 0x115   : > { %v471_v53 = vpop.f32.mrf.mxu0 }
 0x116   : > { %v472_v57 = vadd.f32 %v471_v53, %v276_v50  ;;  %v486_v61 = vadd.f32 %v470_v54, %v464_v56 }
 0x117   : > { %v475_v55 = vpop.f32.mrf.mxu0 }
 0x118   : > { %v476_v58 = vadd.f32 %v475_v55, %v281_v52  ;;  %v495_v1 = vadd.f32 %v472_v57, %v466_v60 }
 0x119   : > { %v477_v59 = vpop.f32.mrf.mxu0 }
 0x11a   : > { %v478_v62 = vadd.f32 %v477_v59, %v281_v52  ;;  %v487_v3 = vadd.f32 %v486_v61, %v476_v58 }
 0x11b   : > { %v481_v0 = vpop.f32.mrf.mxu0 }
 0x11c   : > { %v482_v5 = vadd.f32 %v481_v0, %v286_v63  ;;  %v496_v7 = vadd.f32 %v495_v1, %v478_v62  ;;  %v569_v0 = vpop.permute.xlu0 %568 }
 0x11d   : > { %v483_v6 = vpop.f32.mrf.mxu0 }
 0x11e   : > { %v488_v8 = vadd.f32 %v487_v3, %v482_v5  ;;  %v484_v9 = vadd.f32 %v483_v6, %v286_v63  ;;  %v565_v63 = vpop.permute.xlu1 %564 }
 0x120   : > { %v489_v10 = vrot.slane %v488_v8, 4  ;;  %v497_v11 = vadd.f32 %v496_v7, %v484_v9  ;;  %v561_v3 = vpop.permute.xlu0 %560 }
 0x122   : > { %v490_v4 = vadd.f32 %v489_v10, %v488_v8  ;;  %v498_v12 = vrot.slane %v497_v11, 4  ;;  %v593_v1 = vpop.permute.xlu1 %592 }
 0x124   : > { %v491_v13 = vrot.slane %v490_v4, 2  ;;  %v499_v14 = vadd.f32 %v498_v12, %v497_v11 }
 0x126   : > { %v492_v15 = vadd.f32 %v491_v13, %v490_v4  ;;  %v500_v16 = vrot.slane %v499_v14, 2  ;;  %v589_v10 = vpop.permute.xlu1 %588  ;;  %v557_v13 = vpop.permute.xlu0 %556 }
 0x128   : > { %v493_v17 = vrot.slane %v492_v15, 1  ;;  %v501_v18 = vadd.f32 %v500_v16, %v499_v14 }
 0x12a   : > { %v494_v19 = vadd.f32 %v493_v17, %v492_v15  ;;  %v502_v20 = vrot.slane %v501_v18, 1 }
 0x12c   : > { %v505_v21 = vmul.f32 0.03125, %v494_v19  ;;  %v503_v22 = vadd.f32 %v502_v20, %v501_v18 }
 0x12e   : > { %v506_v23 = vmul.f32 0.03125, %v503_v22  ;;  %v507_v24 = vsub.f32 %v464_v56, %v505_v21  ;;  %v509_v25 = vsub.f32 %v470_v54, %v505_v21  ;;  %v511_v26 = vsub.f32 %v476_v58, %v505_v21 }
 0x12f   : > { %v513_v29 = vsub.f32 %v482_v5, %v505_v21 }
 0x130   : > { %v508_v27 = vsub.f32 %v466_v60, %v506_v23  ;;  %v510_v28 = vsub.f32 %v472_v57, %v506_v23  ;;  %v512_v30 = vsub.f32 %v478_v62, %v506_v23  ;;  %v515_v31 = vmul.f32 %v507_v24, %v507_v24 }
 0x131   : > { %v517_v32 = vmul.f32 %v509_v25, %v509_v25  ;;  %v514_v33 = vsub.f32 %v484_v9, %v506_v23  ;;  %v519_v36 = vmul.f32 %v511_v26, %v511_v26  ;;  %v521_v40 = vmul.f32 %v513_v29, %v513_v29 }
 0x132   : > { %v516_v34 = vmul.f32 %v508_v27, %v508_v27  ;;  %v518_v35 = vmul.f32 %v510_v28, %v510_v28  ;;  %v520_v38 = vmul.f32 %v512_v30, %v512_v30 }
 0x133   : > { %v523_v37 = vadd.f32 %v517_v32, %v515_v31  ;;  %v522_v42 = vmul.f32 %v514_v33, %v514_v33 }
 0x134   : > { %v532_v39 = vadd.f32 %v518_v35, %v516_v34 }
 0x135   : > { %v524_v41 = vadd.f32 %v523_v37, %v519_v36 }
 0x136   : > { %v533_v44 = vadd.f32 %v532_v39, %v520_v38 }
 0x137   : > { %v525_v45 = vadd.f32 %v524_v41, %v521_v40 }
 0x138   : > { %v534_v46 = vadd.f32 %v533_v44, %v522_v42  ;;  %v611_v42 = vld [vmem:[%s1521_s2] sm:$0xff]  ;;  %v612_v44 = vld [vmem:[%s1521_s2 + $0x8] sm:$0xff] }
 0x139   : > { %v526_v47 = vrot.slane %v525_v45, 4 }
 0x13a   : > { %v535_v48 = vrot.slane %v534_v46, 4 }
 0x13b   : > { %v527_v49 = vadd.f32 %v526_v47, %v525_v45  ;;  %v613_v45 = vld [vmem:[%s1521_s2 + $0x10] sm:$0xff]  ;;  %v1236_v47 = vmov 6  }
 0x13c   : > { %v536_v50 = vadd.f32 %v535_v48, %v534_v46  ;;  %v614_v46 = vld [vmem:[%s1521_s2 + $0x18] sm:$0xff]  ;;  %1211 = vset.pattern.permute.xlu1 %v1236_v47 }
 0x13d   : > { %v528_v51 = vrot.slane %v527_v49, 2  ;;  %859 = vperm.xlu1 %1211, %v1285_v2  }
 0x13e   : > { %v537_v52 = vrot.slane %v536_v50, 2 }
 0x13f   : > { %v529_v53 = vadd.f32 %v528_v51, %v527_v49 }
 0x140   : > { %v538_v54 = vadd.f32 %v537_v52, %v536_v50 }
 0x141   : > { %v530_v55 = vrot.slane %v529_v53, 1 }
 0x142   : > { %v539_v56 = vrot.slane %v538_v54, 1 }
 0x143   : > { %v531_v57 = vadd.f32 %v530_v55, %v529_v53 }
 0x144   : > { %v540_v58 = vadd.f32 %v539_v56, %v538_v54 }
 0x145   : > { %v541_v59 = vmul.f32 0.03125, %v531_v57 }
 0x146   : > { %v542_v60 = vmul.f32 0.03125, %v540_v58 }
 0x147   : > { %v543_v61 = vadd.f32 1e-05, %v541_v59 }
 0x148   : > { %v544_v62 = vadd.f32 1e-05, %v542_v60 }
 0x149   : > { %1213 = vrsqrt.f32 %v543_v61 }
 0x14a   : > { %1215 = vrsqrt.f32 %v544_v62 }
 0x156   : > { %v1214_v5 = vpop.eup %1213 }
 0x157   : > { %v1216_v6 = vpop.eup %1215  ;;  %v551_v7 = vmul.f32 %v1214_v5, %v511_v26  ;;  %v553_v8 = vmul.f32 %v1214_v5, %v513_v29  ;;  %v549_v9 = vmul.f32 %v1214_v5, %v509_v25  ;;  %v547_v17 = vmul.f32 %v1214_v5, %v507_v24  ;;  %v585_v25 = vpop.permute.xlu1 %584 }
 0x158   : > { %v552_v11 = vmul.f32 %v1216_v6, %v512_v30  ;;  %v554_v4 = vmul.f32 %v1216_v6, %v514_v33  ;;  %v550_v12 = vmul.f32 %v1216_v6, %v510_v28  ;;  %v548_v14 = vmul.f32 %v1216_v6, %v508_v27  ;;  %v581_v30 = vpop.permute.xlu0 %580 }
 0x159   : > { %v575_v15 = vmul.f32 %v565_v63, %v551_v7  ;;  %v577_v16 = vmul.f32 %v569_v0, %v553_v8  ;;  %v573_v22 = vmul.f32 %v561_v3, %v549_v9  ;;  %v571_v29 = vmul.f32 %v557_v13, %v547_v17 }
 0x15a   : > { %v576_v18 = vmul.f32 %v565_v63, %v552_v11  ;;  %v578_v19 = vmul.f32 %v569_v0, %v554_v4  ;;  %v574_v20 = vmul.f32 %v561_v3, %v550_v12  ;;  %v572_v31 = vmul.f32 %v557_v13, %v548_v14 }
 0x15b   : > { %v601_v21 = vadd.f32 %v593_v1, %v577_v16  ;;  %v599_v26 = vadd.f32 %v589_v10, %v575_v15  ;;  %v597_v28 = vadd.f32 %v585_v25, %v573_v22  ;;  %v595_v37 = vadd.f32 %v581_v30, %v571_v29  ;;  %v617_v48 = vpop.permute.xlu1 %616 }
 0x15c   : > { %v600_v23 = vadd.f32 %v589_v10, %v576_v18  ;;  %v602_v32 = vadd.f32 %v593_v1, %v578_v19  ;;  %v598_v34 = vadd.f32 %v585_v25, %v574_v20  ;;  %v596_v36 = vadd.f32 %v581_v30, %v572_v31  ;;  %v625_v54 = vpop.permute.xlu0 %624 }
 0x15d   : > { %v609_v35 = vmax.f32 %v601_v21, 0.0  ;;  %v607_v24 = vmax.f32 %v599_v26, 0.0  ;;  %v605_v39 = vmax.f32 %v597_v28, 0.0  ;;  %v603_v41 = vmax.f32 %v595_v37, 0.0 }
 0x15e   : > { %v610_v33 = vmax.f32 %v602_v32, 0.0  ;;  %v608_v27 = vmax.f32 %v600_v23, 0.0  ;;  %v606_v38 = vmax.f32 %v598_v34, 0.0  ;;  %v604_v40 = vmax.f32 %v596_v36, 0.0 }
 0x15f   : > { %v621_v52 = vpop.permute.xlu1 %620 }
 0x160   : > { %668 = vmatprep.subr.mxu1 %v610_v33 }
 0x161   : > { %669 = vmatpush1.msra.mxu1 %v609_v35 }
 0x162   : > { %670 = vmatprep.subr.mxu1 %v608_v27 }
 0x163   : > { %671 = vmatpush1.msra.mxu1 %v607_v24  ;;  %v629_v63 = vpop.permute.xlu1 %628 }
 0x164   : > { %672 = vmatprep.subr.mxu1 %v606_v38 }
 0x165   : > { %673 = vmatpush1.msra.mxu1 %v605_v39 }
 0x166   : > { %674 = vmatprep.subr.mxu1 %v604_v40 }
 0x167   : > { %675 = vmatpush1.msra.mxu1 %v603_v41 }
 0x168   : > { %1134 = vmatmul.mubr.msk.f32.vlgmr.msra.gmra.mxu1 %vm631_vm1, %v611_v42 }
 0x169   : > { %714 = vmatprep.mubr.f32.mxu1 %v1232_v43 }
 0x16c   : > { %1135 = vmatmul.mubr.msk.f32.gmra.mxu1 %vm631_vm1, %v612_v44 }
 0x16d   : > { %720 = vmatprep.mubr.f32.mxu1 %v1232_v43 }
 0x170   : > { %1136 = vmatmul.mubr.msk.f32.gmra.mxu1 %vm631_vm1, %v613_v45 }
 0x171   : > { %726 = vmatprep.mubr.f32.mxu1 %v1232_v43 }
 0x174   : > { %1137 = vmatmul.mubr.msk.f32.gmra.mxu1 %vm631_vm1, %v614_v46 }
 0x175   : > { %929 = vmatprep.mubr.f32.mxu1 %v1232_v43 }
 0x228   : > { %v710_v49 = vpop.f32.mrf.mxu1 }
 0x229   : > { %v711_v57 = vadd.f32 %v710_v49, %v617_v48 }
 0x22a   : > { %v712_v50 = vpop.f32.mrf.mxu1 }
 0x22b   : > { %v713_v61 = vadd.f32 %v712_v50, %v617_v48 }
 0x22c   : > { %v716_v51 = vpop.f32.mrf.mxu1 }
 0x22d   : > { %v717_v55 = vadd.f32 %v716_v51, %v621_v52 }
 0x22e   : > { %v718_v53 = vpop.f32.mrf.mxu1 }
 0x22f   : > { %v719_v58 = vadd.f32 %v718_v53, %v621_v52  ;;  %v733_v43 = vadd.f32 %v717_v55, %v711_v57 }
 0x230   : > { %v722_v56 = vpop.f32.mrf.mxu1 }
 0x231   : > { %v723_v59 = vadd.f32 %v722_v56, %v625_v54  ;;  %v742_v1 = vadd.f32 %v719_v58, %v713_v61 }
 0x232   : > { %v724_v60 = vpop.f32.mrf.mxu1 }
 0x233   : > { %v725_v62 = vadd.f32 %v724_v60, %v625_v54  ;;  %v734_v2 = vadd.f32 %v733_v43, %v723_v59  ;;  %v815_v60 = vpop.permute.xlu1 %814 }
 0x234   : > { %v728_v0 = vpop.f32.mrf.mxu1 }
 0x235   : > { %v729_v3 = vadd.f32 %v728_v0, %v629_v63  ;;  %v743_v6 = vadd.f32 %v742_v1, %v725_v62  ;;  %v811_v1 = vpop.permute.xlu0 %810 }
 0x236   : > { %v730_v5 = vpop.f32.mrf.mxu1 }
 0x237   : > { %v735_v7 = vadd.f32 %v734_v2, %v729_v3  ;;  %v731_v8 = vadd.f32 %v730_v5, %v629_v63  ;;  %v839_v63 = vpop.permute.xlu1 %838 }
 0x239   : > { %v736_v9 = vrot.slane %v735_v7, 4  ;;  %v744_v10 = vadd.f32 %v743_v6, %v731_v8 }
 0x23b   : > { %v737_v11 = vadd.f32 %v736_v9, %v735_v7  ;;  %v745_v4 = vrot.slane %v744_v10, 4  ;;  %v807_v0 = vpop.permute.xlu1 %806 }
 0x23d   : > { %v738_v12 = vrot.slane %v737_v11, 2  ;;  %v746_v13 = vadd.f32 %v745_v4, %v744_v10 }
 0x23f   : > { %v739_v14 = vadd.f32 %v738_v12, %v737_v11  ;;  %v747_v15 = vrot.slane %v746_v13, 2  ;;  %v803_v6 = vpop.permute.xlu1 %802 }
 0x241   : > { %v740_v16 = vrot.slane %v739_v14, 1  ;;  %v748_v17 = vadd.f32 %v747_v15, %v746_v13  ;;  %v835_v13 = vpop.permute.xlu0 %834 }
 0x243   : > { %v741_v18 = vadd.f32 %v740_v16, %v739_v14  ;;  %v749_v19 = vrot.slane %v748_v17, 1 }
 0x245   : > { %v751_v20 = vmul.f32 0.03125, %v741_v18  ;;  %v750_v21 = vadd.f32 %v749_v19, %v748_v17 }
 0x247   : > { %v753_v22 = vsub.f32 %v711_v57, %v751_v20  ;;  %v755_v23 = vsub.f32 %v717_v55, %v751_v20  ;;  %v757_v31 = vsub.f32 %v723_v59, %v751_v20  ;;  %v752_v32 = vmul.f32 0.03125, %v750_v21 }
 0x248   : > { %v759_v26 = vsub.f32 %v729_v3, %v751_v20 }
 0x249   : > { %v761_v29 = vmul.f32 %v753_v22, %v753_v22  ;;  %v763_v25 = vmul.f32 %v755_v23, %v755_v23  ;;  %v754_v34 = vsub.f32 %v713_v61, %v752_v32  ;;  %v756_v30 = vsub.f32 %v719_v58, %v752_v32 }
 0x24a   : > { %v758_v33 = vsub.f32 %v725_v62, %v752_v32  ;;  %v765_v28 = vmul.f32 %v757_v31, %v757_v31  ;;  %v760_v27 = vsub.f32 %v731_v8, %v752_v32  ;;  %v767_v37 = vmul.f32 %v759_v26, %v759_v26 }
 0x24b   : > { %v769_v35 = vadd.f32 %v763_v25, %v761_v29  ;;  %v762_v36 = vmul.f32 %v754_v34, %v754_v34  ;;  %v764_v24 = vmul.f32 %v756_v30, %v756_v30 }
 0x24c   : > { %v766_v39 = vmul.f32 %v758_v33, %v758_v33  ;;  %v768_v42 = vmul.f32 %v760_v27, %v760_v27 }
 0x24d   : > { %v770_v38 = vadd.f32 %v769_v35, %v765_v28  ;;  %v778_v40 = vadd.f32 %v764_v24, %v762_v36  ;;  %v827_v35 = vpop.permute.xlu0 %826 }
 0x24f   : > { %v771_v41 = vadd.f32 %v770_v38, %v767_v37  ;;  %v779_v44 = vadd.f32 %v778_v40, %v766_v39  ;;  %v857_v40 = vld [vmem:[%s1522_s3] sm:$0xff] }
 0x251   : > { %v772_v45 = vrot.slane %v771_v41, 4  ;;  %v780_v46 = vadd.f32 %v779_v44, %v768_v42 }
 0x253   : > { %v773_v48 = vadd.f32 %v772_v45, %v771_v41  ;;  %v781_v49 = vrot.slane %v780_v46, 4 }
 0x255   : > { %v774_v50 = vrot.slane %v773_v48, 2  ;;  %v782_v51 = vadd.f32 %v781_v49, %v780_v46 }
 0x257   : > { %v775_v52 = vadd.f32 %v774_v50, %v773_v48  ;;  %v783_v53 = vrot.slane %v782_v51, 2 }
 0x259   : > { %v776_v54 = vrot.slane %v775_v52, 1  ;;  %v784_v55 = vadd.f32 %v783_v53, %v782_v51 }
 0x25b   : > { %v777_v56 = vadd.f32 %v776_v54, %v775_v52  ;;  %v785_v57 = vrot.slane %v784_v55, 1 }
 0x25d   : > { %v787_v58 = vmul.f32 0.03125, %v777_v56  ;;  %v786_v59 = vadd.f32 %v785_v57, %v784_v55 }
 0x25f   : > { %v789_v61 = vadd.f32 1e-05, %v787_v58  ;;  %v788_v43 = vmul.f32 0.03125, %v786_v59 }
 0x261   : > { %1217 = vrsqrt.f32 %v789_v61  ;;  %v790_v62 = vadd.f32 1e-05, %v788_v43 }
 0x263   : > { %1219 = vrsqrt.f32 %v790_v62 }
 0x26e   : > { %v1218_v2 = vpop.eup %1217 }
 0x26f   : > { %v799_v3 = vmul.f32 %v1218_v2, %v759_v26  ;;  %v797_v5 = vmul.f32 %v1218_v2, %v757_v31  ;;  %v795_v9 = vmul.f32 %v1218_v2, %v755_v23  ;;  %v793_v15 = vmul.f32 %v1218_v2, %v753_v22  ;;  %v831_v31 = vpop.permute.xlu1 %830 }
 0x270   : > { %v1220_v7 = vpop.eup %1219 }
 0x271   : > { %v823_v8 = vmul.f32 %v815_v60, %v799_v3  ;;  %v800_v10 = vmul.f32 %v1220_v7, %v760_v27  ;;  %v796_v11 = vmul.f32 %v1220_v7, %v756_v30  ;;  %v798_v4 = vmul.f32 %v1220_v7, %v758_v33 }
 0x272   : > { %v794_v12 = vmul.f32 %v1220_v7, %v754_v34  ;;  %v821_v14 = vmul.f32 %v811_v1, %v797_v5  ;;  %v819_v20 = vmul.f32 %v807_v0, %v795_v9  ;;  %v817_v29 = vmul.f32 %v803_v6, %v793_v15 }
 0x273   : > { %v824_v16 = vmul.f32 %v815_v60, %v800_v10  ;;  %v820_v17 = vmul.f32 %v807_v0, %v796_v11  ;;  %v822_v18 = vmul.f32 %v811_v1, %v798_v4  ;;  %v847_v19 = vadd.f32 %v839_v63, %v823_v8  ;;  %v860_v41 = vpop.permute.xlu1 %859 }
 0x274   : > { %v818_v32 = vmul.f32 %v803_v6, %v794_v12  ;;  %v845_v25 = vadd.f32 %v835_v13, %v821_v14  ;;  %v843_v33 = vadd.f32 %v831_v31, %v819_v20  ;;  %v841_v36 = vadd.f32 %v827_v35, %v817_v29 }
 0x275   : > { %v848_v21 = vadd.f32 %v839_v63, %v824_v16  ;;  %v846_v26 = vadd.f32 %v835_v13, %v822_v18  ;;  %v844_v23 = vadd.f32 %v831_v31, %v820_v17  ;;  %v855_v30 = vmax.f32 %v847_v19, 0.0 }
 0x276   : > { %v842_v27 = vadd.f32 %v827_v35, %v818_v32  ;;  %v853_v22 = vmax.f32 %v845_v25, 0.0  ;;  %v851_v37 = vmax.f32 %v843_v33, 0.0  ;;  %v849_v39 = vmax.f32 %v841_v36, 0.0 }
 0x277   : > { %v856_v28 = vmax.f32 %v848_v21, 0.0  ;;  %v854_v34 = vmax.f32 %v846_v26, 0.0  ;;  %v852_v24 = vmax.f32 %v844_v23, 0.0 }
 0x278   : > { %v850_v38 = vmax.f32 %v842_v27, 0.0 }
 0x279   : > { %889 = vmatprep.subr.mxu1 %v856_v28 }
 0x27a   : > { %890 = vmatpush1.msra.mxu1 %v855_v30 }
 0x27b   : > { %891 = vmatprep.subr.mxu1 %v854_v34 }
 0x27c   : > { %892 = vmatpush1.msra.mxu1 %v853_v22 }
 0x27d   : > { %893 = vmatprep.subr.mxu1 %v852_v24 }
 0x27e   : > { %894 = vmatpush1.msra.mxu1 %v851_v37 }
 0x27f   : > { %895 = vmatprep.subr.mxu1 %v850_v38 }
 0x280   : > { %896 = vmatpush1.msra.mxu1 %v849_v39 }
 0x281   : > { %1138 = vmatmul.mubr.msk.f32.vlgmr.msra.gmra.mxu1 %vm631_vm1, %v857_v40 }
 0x341   : > { %v931_v42 = vpop.f32.mrf.mxu1 }
 0x342   : > { %v932_v44 = vadd.f32 %v931_v42, %v860_v41 }
 0x343   : > { %v933_v45 = vpop.f32.mrf.mxu1 }
 0x344   : > { %v934_v46 = vadd.f32 %v933_v45, %v860_v41  ;;  %936 = vxpose.xlu0.b32.start.end [1/1] (short) %v932_v44, 128 }
 0x346   : > { %968 = vxpose.xlu1.b32.start.end [1/1] (short) %v934_v46, 128 }
 0x36d   : > { %1212 = vset.pattern.permute.xlu0 %v1236_v47 }
 0x3c0   : > { %v952_v48 = vpop.trf.xlu0 }
 0x3c1   : > { %1001 = vst.msk [vmem:[%s1450_s30] sm:$0xff] %vm1000_vm2, %v952_v48 }
 0x3c2   : > { %v984_v47 = vpop.trf.xlu1 }
 0x3c3   : > { %1017 = vst.msk [vmem:[%s1450_s30 + $0x80] sm:$0xff] %vm1000_vm2, %v984_v47 }
 0x3c4   : > { %v953_v49 = vpop.trf.xlu0 }
 0x3c5   : > { %1002 = vst.msk [vmem:[%s1450_s30 + $0x8] sm:$0xff] %vm1000_vm2, %v953_v49 }
 0x3c6   : > { %v985_v50 = vpop.trf.xlu1 }
 0x3c7   : > { %1018 = vst.msk [vmem:[%s1450_s30 + $0x88] sm:$0xff] %vm1000_vm2, %v985_v50 }
 0x3c8   : > { %v954_v51 = vpop.trf.xlu0 }
 0x3c9   : > { %1003 = vst.msk [vmem:[%s1450_s30 + $0x10] sm:$0xff] %vm1000_vm2, %v954_v51 }
 0x3ca   : > { %v986_v52 = vpop.trf.xlu1 }
 0x3cb   : > { %1019 = vst.msk [vmem:[%s1450_s30 + $0x90] sm:$0xff] %vm1000_vm2, %v986_v52 }
 0x3cc   : > { %v955_v53 = vpop.trf.xlu0 }
 0x3cd   : > { %1004 = vst.msk [vmem:[%s1450_s30 + $0x18] sm:$0xff] %vm1000_vm2, %v955_v53 }
 0x3ce   : > { %v987_v54 = vpop.trf.xlu1 }
 0x3cf   : > { %1020 = vst.msk [vmem:[%s1450_s30 + $0x98] sm:$0xff] %vm1000_vm2, %v987_v54 }
 0x3d0   : > { %v956_v55 = vpop.trf.xlu0 }
 0x3d1   : > { %1005 = vst.msk [vmem:[%s1450_s30 + $0x20] sm:$0xff] %vm1000_vm2, %v956_v55 }
 0x3d2   : > { %v988_v56 = vpop.trf.xlu1 }
 0x3d3   : > { %1021 = vst.msk [vmem:[%s1450_s30 + $0xa0] sm:$0xff] %vm1000_vm2, %v988_v56 }
 0x3d4   : > { %v957_v57 = vpop.trf.xlu0 }
 0x3d5   : > { %1006 = vst.msk [vmem:[%s1450_s30 + $0x28] sm:$0xff] %vm1000_vm2, %v957_v57 }
 0x3d6   : > { %v989_v58 = vpop.trf.xlu1 }
 0x3d7   : > { %1022 = vst.msk [vmem:[%s1450_s30 + $0xa8] sm:$0xff] %vm1000_vm2, %v989_v58 }
 0x3d8   : > { %v958_v59 = vpop.trf.xlu0 }
 0x3d9   : > { %1007 = vst.msk [vmem:[%s1450_s30 + $0x30] sm:$0xff] %vm1000_vm2, %v958_v59 }
 0x3da   : > { %v990_v60 = vpop.trf.xlu1 }
 0x3db   : > { %1023 = vst.msk [vmem:[%s1450_s30 + $0xb0] sm:$0xff] %vm1000_vm2, %v990_v60 }
 0x3dc   : > { %v959_v61 = vpop.trf.xlu0 }
 0x3dd   : > { %1008 = vst.msk [vmem:[%s1450_s30 + $0x38] sm:$0xff] %vm1000_vm2, %v959_v61 }
 0x3de   : > { %v991_v43 = vpop.trf.xlu1 }
 0x3df   : > { %1024 = vst.msk [vmem:[%s1450_s30 + $0xb8] sm:$0xff] %vm1000_vm2, %v991_v43 }
 0x3e0   : > { %v960_v62 = vpop.trf.xlu0 }
 0x3e1   : > { %1009 = vst.msk [vmem:[%s1450_s30 + $0x40] sm:$0xff] %vm1000_vm2, %v960_v62 }
 0x3e2   : > { %v992_v63 = vpop.trf.xlu1 }
 0x3e3   : > { %1025 = vst.msk [vmem:[%s1450_s30 + $0xc0] sm:$0xff] %vm1000_vm2, %v992_v63 }
 0x3e4   : > { %v961_v0 = vpop.trf.xlu0 }
 0x3e5   : > { %1010 = vst.msk [vmem:[%s1450_s30 + $0x48] sm:$0xff] %vm1000_vm2, %v961_v0 }
 0x3e6   : > { %v993_v1 = vpop.trf.xlu1 }
 0x3e7   : > { %1026 = vst.msk [vmem:[%s1450_s30 + $0xc8] sm:$0xff] %vm1000_vm2, %v993_v1 }
 0x3e8   : > { %v962_v2 = vpop.trf.xlu0 }
 0x3e9   : > { %1011 = vst.msk [vmem:[%s1450_s30 + $0x50] sm:$0xff] %vm1000_vm2, %v962_v2 }
 0x3ea   : > { %v994_v3 = vpop.trf.xlu1 }
 0x3eb   : > { %1027 = vst.msk [vmem:[%s1450_s30 + $0xd0] sm:$0xff] %vm1000_vm2, %v994_v3 }
 0x3ec   : > { %v963_v5 = vpop.trf.xlu0 }
 0x3ed   : > { %1012 = vst.msk [vmem:[%s1450_s30 + $0x58] sm:$0xff] %vm1000_vm2, %v963_v5 }
 0x3ee   : > { %v995_v6 = vpop.trf.xlu1 }
 0x3ef   : > { %1028 = vst.msk [vmem:[%s1450_s30 + $0xd8] sm:$0xff] %vm1000_vm2, %v995_v6 }
 0x3f0   : > { %v964_v7 = vpop.trf.xlu0 }
 0x3f1   : > { %1013 = vst.msk [vmem:[%s1450_s30 + $0x60] sm:$0xff] %vm1000_vm2, %v964_v7 }
 0x3f2   : > { %v996_v8 = vpop.trf.xlu1 }
 0x3f3   : > { %1029 = vst.msk [vmem:[%s1450_s30 + $0xe0] sm:$0xff] %vm1000_vm2, %v996_v8 }
 0x3f4   : > { %v965_v9 = vpop.trf.xlu0 }
 0x3f5   : > { %1014 = vst.msk [vmem:[%s1450_s30 + $0x68] sm:$0xff] %vm1000_vm2, %v965_v9 }
 0x3f6   : > { %v997_v10 = vpop.trf.xlu1 }
 0x3f7   : > { %1030 = vst.msk [vmem:[%s1450_s30 + $0xe8] sm:$0xff] %vm1000_vm2, %v997_v10 }
 0x3f8   : > { %v966_v11 = vpop.trf.xlu0 }
 0x3f9   : > { %1015 = vst.msk [vmem:[%s1450_s30 + $0x70] sm:$0xff] %vm1000_vm2, %v966_v11 }
 0x3fa   : > { %v998_v4 = vpop.trf.xlu1 }
 0x3fb   : > { %1031 = vst.msk [vmem:[%s1450_s30 + $0xf0] sm:$0xff] %vm1000_vm2, %v998_v4 }
 0x3fc   : > { %v967_v12 = vpop.trf.xlu0 }
 0x3fd   : > { %1016 = vst.msk [vmem:[%s1450_s30 + $0x78] sm:$0xff] %vm1000_vm2, %v967_v12 }
 0x3fe   : > { %v999_v13 = vpop.trf.xlu1 }
 0x3ff   : > { %1032 = vst.msk [vmem:[%s1450_s30 + $0xf8] sm:$0xff] %vm1000_vm2, %v999_v13 }
 0x400 PF: > { %s15_s18 = sadd.s32 1, %s1227_s18  }
 0x401   : > { %p12_p4 = scmp.ge.s32.totalorder %s15_s18, 4  }
 0x403   :  { %14 = sbr.rel (!%p12_p4) target bundleno = 1 (0x1), region = 70 }

</bundles_post_ra>
